<compile_context>
chip_gen: v7x
topology: tpu7x:2x2x1
jax: 0.10.0
libtpu: 0.0.40
codegen_flags: <defaults>
</compile_context>

<pallas_src>
import jax
import jax.numpy as jnp
from jax.experimental import pallas as pl
from jax.experimental.pallas import tpu as pltpu

SIZE_MAP = {4: 2 * 28, 8: 2 * 14, 16: 2 * 14, 32: 2 * 14, 64: 14, 256: 7}


def _round_up(x, m):
    return (x + m - 1) // m * m


def timemlp_kernel(t_ref, w1_ref, b1_ref, w2_ref, b2_ref, o_ref):
    # t_ref: (TB, E), w1_ref: (E, H), b1_ref: (1, H),
    # w2_ref: (H, N_pad), b2_ref: (1, N_pad), o_ref: (TB, N_pad)
    h = jnp.dot(t_ref[...], w1_ref[...], preferred_element_type=jnp.float32)
    h = h + b1_ref[...]                      # broadcast (1, H) -> (TB, H), f32 VPU
    h = h * jax.nn.sigmoid(h)                # SiLU; exp/recip on EUP slot
    o = jnp.dot(h, w2_ref[...], preferred_element_type=jnp.float32)
    o = o + b2_ref[...]                      # broadcast (1, N_pad) -> (TB, N_pad)
    o_ref[...] = o.astype(o_ref.dtype)       # dense, unmasked stores (N_pad % 128 == 0)


def time_mlp_forward(t, w1, b1, w2, b2, out_dim, *, batch_tile=128):
    """t: (B, embedding_dim) -> (B, 1, S, S) with S = SIZE_MAP[out_dim]."""
    S = SIZE_MAP[out_dim]
    N = S * S
    B, E = t.shape
    H = w1.shape[1]

    # Lane-dense output width and sublane-dense batch tiling.
    N_pad = _round_up(N, 128)
    TB = batch_tile if B >= batch_tile else _round_up(max(B, 1), 8)
    B_pad = _round_up(B, TB)

    # One-time zero padding in the wrapper (pure data plumbing, sliced back below).
    t_p = t if B_pad == B else jnp.pad(t, ((0, B_pad - B), (0, 0)))
    w2_p = w2 if N_pad == N else jnp.pad(w2, ((0, 0), (0, N_pad - N)))
    b2_p = b2 if N_pad == N else jnp.pad(b2, (0, N_pad - N))
    b1_2d = b1.reshape(1, H)
    b2_2d = b2_p.reshape(1, N_pad)

    grid = (B_pad // TB,)

    itemsize = jnp.dtype(jnp.float32).itemsize
    cost = pl.CostEstimate(
        flops=2 * B_pad * (E * H + H * N_pad),
        transcendentals=B_pad * H,  # sigmoid
        bytes_accessed=(t_p.size + w1.size + b1_2d.size + w2_p.size + b2_2d.size
                        + B_pad * N_pad) * itemsize,
    )

    out_padded = pl.pallas_call(
        timemlp_kernel,
        out_shape=jax.ShapeDtypeStruct((B_pad, N_pad), jnp.float32),
        grid_spec=pltpu.PrefetchScalarGridSpec(
            num_scalar_prefetch=0,
            grid=grid,
            in_specs=[
                pl.BlockSpec((TB, E), lambda i: (i, 0)),      # activations: tiled over batch
                pl.BlockSpec((E, H), lambda i: (0, 0)),       # weights resident across steps
                pl.BlockSpec((1, H), lambda i: (0, 0)),
                pl.BlockSpec((H, N_pad), lambda i: (0, 0)),
                pl.BlockSpec((1, N_pad), lambda i: (0, 0)),
            ],
            out_specs=pl.BlockSpec((TB, N_pad), lambda i: (i, 0)),
        ),
        compiler_params=pltpu.CompilerParams(
            dimension_semantics=("parallel",),
        ),
        cost_estimate=cost,
    )(t_p, w1, b1_2d, w2_p, b2_2d)

    # Strip batch / lane padding, then view as NCHW (B, 1, S, S) like PyTorch.
    out = out_padded[:B, :N]
    return out.reshape(B, 1, S, S)


def init_params(key, embedding_dim, hidden_dim, out_dim):
    """Deterministic synthetic init mimicking nn.Linear's U(-1/sqrt(fan_in), +...)."""
    S = SIZE_MAP[out_dim]
    k1, k2, k3, k4 = jax.random.split(key, 4)
    lim1 = 1.0 / jnp.sqrt(embedding_dim)
    lim2 = 1.0 / jnp.sqrt(hidden_dim)
    w1 = jax.random.uniform(k1, (embedding_dim, hidden_dim), jnp.float32, -lim1, lim1)
    b1 = jax.random.uniform(k2, (hidden_dim,), jnp.float32, -lim1, lim1)
    w2 = jax.random.uniform(k3, (hidden_dim, S * S), jnp.float32, -lim2, lim2)
    b2 = jax.random.uniform(k4, (S * S,), jnp.float32, -lim2, lim2)
    return w1, b1, w2, b2


def _reference(t, w1, b1, w2, b2, out_dim):
    S = SIZE_MAP[out_dim]
    h = t @ w1 + b1
    h = h * jax.nn.sigmoid(h)
    return (h @ w2 + b2).reshape(t.shape[0], 1, S, S)


if __name__ == "__main__":
    key = jax.random.PRNGKey(0)

    # Case 1: tiny batch (module-scale shapes): out_dim=256 -> S=7 -> (B,1,7,7)
    embedding_dim, hidden_dim, out_dim = 32, 64, 256
    batch = 2
    kt, kp, key = jax.random.split(key, 3)
    t = jax.random.normal(kt, (batch, embedding_dim), jnp.float32)
    w1, b1, w2, b2 = init_params(kp, embedding_dim, hidden_dim, out_dim)

    out = time_mlp_forward(t, w1, b1, w2, b2, out_dim)
    out = jax.block_until_ready(out)
    ref = _reference(t, w1, b1, w2, b2, out_dim)
    assert out.shape == (batch, 1, 7, 7)
    assert jnp.allclose(out, ref, atol=1e-5, rtol=1e-5)

    # Case 2: batched-grid path (multiple 128-row tiles, weights VMEM-resident):
    # out_dim=64 -> S=14 -> (B,1,14,14)
    out_dim2 = 64
    batch2 = 256
    kt2, kp2 = jax.random.split(key)
    t2 = jax.random.normal(kt2, (batch2, embedding_dim), jnp.float32)
    w1b, b1b, w2b, b2b = init_params(kp2, embedding_dim, hidden_dim, out_dim2)

    out2 = time_mlp_forward(t2, w1b, b1b, w2b, b2b, out_dim2)
    out2 = jax.block_until_ready(out2)
    ref2 = _reference(t2, w1b, b1b, w2b, b2b, out_dim2)
    assert out2.shape == (batch2, 1, 14, 14)
    assert jnp.allclose(out2, ref2, atol=1e-5, rtol=1e-5)

    print("KERNEL_OK")
</pallas_src>

<mosaic_0001>
module attributes {stable_mosaic.version = 11 : i64} {
  func.func @timemlp_kernel(%arg0: i32, %arg1: memref<8x32xf32, #tpu.memory_space<vmem>>, %arg2: memref<32x64xf32, #tpu.memory_space<vmem>>, %arg3: memref<1x64xf32, #tpu.memory_space<vmem>>, %arg4: memref<64x128xf32, #tpu.memory_space<vmem>>, %arg5: memref<1x128xf32, #tpu.memory_space<vmem>>, %arg6: memref<8x128xf32, #tpu.memory_space<vmem>>) attributes {dimension_semantics = [#tpu.dimension_semantics<parallel>], iteration_bounds = array<i64: 1>, scalar_prefetch = 0 : i64, scratch_operands = 0 : i64, tpu.core_type = #tpu.core_type<tc>, window_params = [{transform_indices = @transform_0, window_bounds = array<i64: 8, 32>}, {pipeline_mode = #tpu.pipeline_mode<synchronous>, transform_indices = @transform_1, window_bounds = array<i64: 32, 64>}, {pipeline_mode = #tpu.pipeline_mode<synchronous>, transform_indices = @transform_2, window_bounds = array<i64: 1, 64>}, {pipeline_mode = #tpu.pipeline_mode<synchronous>, transform_indices = @transform_3, window_bounds = array<i64: 64, 128>}, {pipeline_mode = #tpu.pipeline_mode<synchronous>, transform_indices = @transform_4, window_bounds = array<i64: 1, 128>}, {transform_indices = @transform_5, window_bounds = array<i64: 8, 128>}]} {
    %c0 = arith.constant 0 : index
    %c0_0 = arith.constant 0 : index
    %0 = vector.load %arg1[%c0, %c0_0] : memref<8x32xf32, #tpu.memory_space<vmem>>, vector<8x32xf32>
    %c0_1 = arith.constant 0 : index
    %c0_2 = arith.constant 0 : index
    %1 = vector.load %arg2[%c0_1, %c0_2] : memref<32x64xf32, #tpu.memory_space<vmem>>, vector<32x64xf32>
    %cst = arith.constant dense<0.000000e+00> : vector<8x64xf32>
    %2 = tpu.matmul %0, %1, %cst {dimension_numbers = #tpu.dot_dimension_numbers<[1], [0], [0], [1], [0, 0, 1, 1], [], []>} : vector<8x32xf32>, vector<32x64xf32>, vector<8x64xf32> -> vector<8x64xf32>
    %c0_3 = arith.constant 0 : index
    %c0_4 = arith.constant 0 : index
    %3 = vector.load %arg3[%c0_3, %c0_4] : memref<1x64xf32, #tpu.memory_space<vmem>>, vector<1x64xf32>
    %4 = vector.broadcast %3 : vector<1x64xf32> to vector<8x64xf32>
    %5 = arith.addf %2, %4 : vector<8x64xf32>
    %6 = arith.negf %5 : vector<8x64xf32>
    %7 = math.exp %6 : vector<8x64xf32>
    %cst_5 = arith.constant 1.000000e+00 : f32
    %8 = vector.broadcast %cst_5 : f32 to vector<8x64xf32>
    %9 = arith.addf %8, %7 : vector<8x64xf32>
    %10 = arith.divf %8, %9 : vector<8x64xf32>
    %11 = arith.mulf %5, %10 : vector<8x64xf32>
    %c0_6 = arith.constant 0 : index
    %c0_7 = arith.constant 0 : index
    %12 = vector.load %arg4[%c0_6, %c0_7] : memref<64x128xf32, #tpu.memory_space<vmem>>, vector<64x128xf32>
    %cst_8 = arith.constant dense<0.000000e+00> : vector<8x128xf32>
    %13 = tpu.matmul %11, %12, %cst_8 {dimension_numbers = #tpu.dot_dimension_numbers<[1], [0], [0], [1], [0, 0, 1, 1], [], []>} : vector<8x64xf32>, vector<64x128xf32>, vector<8x128xf32> -> vector<8x128xf32>
    %c0_9 = arith.constant 0 : index
    %c0_10 = arith.constant 0 : index
    %14 = vector.load %arg5[%c0_9, %c0_10] : memref<1x128xf32, #tpu.memory_space<vmem>>, vector<1x128xf32>
    %15 = vector.broadcast %14 : vector<1x128xf32> to vector<8x128xf32>
    %16 = arith.addf %13, %15 : vector<8x128xf32>
    %c0_11 = arith.constant 0 : index
    %c0_12 = arith.constant 0 : index
    %17 = vector.load %arg6[%c0_11, %c0_12] : memref<8x128xf32, #tpu.memory_space<vmem>>, vector<8x128xf32>
    tpu.vector_store %arg6[%c0_11, %c0_12], %16 {strides = array<i32>} : memref<8x128xf32, #tpu.memory_space<vmem>>, vector<8x128xf32>,
    return
  }
  func.func @transform_0(%arg0: i32) -> (i32, i32) {
    %c0_i32 = arith.constant 0 : i32
    %c0_i32_0 = arith.constant 0 : i32
    return %arg0, %c0_i32 : i32, i32
  }
  func.func @transform_1(%arg0: i32) -> (i32, i32) {
    %c0_i32 = arith.constant 0 : i32
    %c0_i32_0 = arith.constant 0 : i32
    %c0_i32_1 = arith.constant 0 : i32
    return %c0_i32, %c0_i32_0 : i32, i32
  }
  func.func @transform_2(%arg0: i32) -> (i32, i32) {
    %c0_i32 = arith.constant 0 : i32
    %c0_i32_0 = arith.constant 0 : i32
    %c0_i32_1 = arith.constant 0 : i32
    return %c0_i32, %c0_i32_0 : i32, i32
  }
  func.func @transform_3(%arg0: i32) -> (i32, i32) {
    %c0_i32 = arith.constant 0 : i32
    %c0_i32_0 = arith.constant 0 : i32
    %c0_i32_1 = arith.constant 0 : i32
    return %c0_i32, %c0_i32_0 : i32, i32
  }
  func.func @transform_4(%arg0: i32) -> (i32, i32) {
    %c0_i32 = arith.constant 0 : i32
    %c0_i32_0 = arith.constant 0 : i32
    %c0_i32_1 = arith.constant 0 : i32
    return %c0_i32, %c0_i32_0 : i32, i32
  }
  func.func @transform_5(%arg0: i32) -> (i32, i32) {
    %c0_i32 = arith.constant 0 : i32
    %c0_i32_0 = arith.constant 0 : i32
    return %arg0, %c0_i32 : i32, i32
  }
}

</mosaic_0001>

<bundles_post_ra>
// kernel: tpu_custom_call.1
= control target key start
LH: loop header
LB: loop body
LE: loop exit
PB: predicated region body
PF: predicated region fallthrough
CT: control target
= control target key end

     0   :  { %10 = vsyncpa [#allocation3], 0  ;;  %s532_s0 = inlined_call_operand.hbm [shape: f32[8,32], index: 0, kind: input, shape index: {}]   ;;  %s533_s1 = inlined_call_operand.hbm [shape: f32[32,64], index: 1, kind: input, shape index: {}]   ;;  %s534_s2 = inlined_call_operand.vmem [shape: f32[1,64], index: 2, kind: input, shape index: {}]   ;;  %s535_s3 = inlined_call_operand.hbm [shape: f32[64,128], index: 3, kind: input, shape index: {}]   ;;  %s536_s4 = inlined_call_operand.vmem [shape: f32[1,128], index: 4, kind: input, shape index: {}]   ;;  %s537_s5 = inlined_call_operand.hbm [shape: f32[8,128], index: 5, kind: output, shape index: {}]  }
   0x1   :  { %11 = vsyncpa [#allocation6], 0 }
   0x2   :  { %12 = vsyncpa [#allocation4], 0  ;;  %s433_s18 = smov [#allocation5]   ;;  %s339_s22 = scalar_lea.hbm %s533_s1, 512 }
   0x3   :  { %s28_s19 = sshll.u32 %s433_s18, 4  ;;  %p340_p0 = scmp.ne.s32.totalorder %s533_s1, %s339_s22  ;;  %s29_s19 = int_to_ptr.vmem [resolvable:$true] %s28_s19 }
   0x4   :  { %p343_p1 = scmp.lt.u32.totalorder %s339_s22, %s533_s1 }
   0x6   :  { %p345_p2 = pnand %p343_p1, %p340_p0 }
   0x8   :  { %348 = shalt.err (!%p345_p2)
}
   0x9   :  { %s349_s27 = scalar_lea.vmem %s29_s19, 512  ;;  %p354_p4 = scmp.lt.s32.totalorder %s29_s19, %s29_s19 }
   0xa   :  { %p350_p3 = scmp.ne.s32.totalorder %s29_s19, %s349_s27  ;;  %p355_p5 = scmp.lt.s32.totalorder %s349_s27, %s349_s27 }
   0xc   :  { %p356_p6 = por %p355_p5, %p354_p4 }
   0xe   :  { %p357_p7 = pnand %p356_p6, %p350_p3 }
  0x10   :  { %360 = shalt.err (!%p357_p7)
}
  0x11   :  { %s434_s28 = smov 128   ;;  %s435_s29 = smov 8  }
  0x12   :  { %34 = dma.hbm_to_vmem [thread:$0]  %s533_s1, 512, %s29_s19, [#allocation6], %s434_s28, %s434_s28, %s435_s29  }
  0x13   :  { %s436_s7 = smov [#allocation2]   ;;  %s437_s9 = smov [#allocation7]  }
  0x14   :  { %s19_s8 = sshll.u32 %s436_s7, 4  ;;  %s42_s10 = sshll.u32 %s437_s9, 4  ;;  %s20_s8 = int_to_ptr.vmem [resolvable:$true] %s19_s8  ;;  %s43_s10 = int_to_ptr.vmem [resolvable:$true] %s42_s10 }
  0x15   :  { %s361_s13 = scalar_lea.hbm %s532_s0, 128 }
  0x16   :  { %p362_p8 = scmp.ne.s32.totalorder %s532_s0, %s361_s13  ;;  %p365_p9 = scmp.lt.u32.totalorder %s361_s13, %s532_s0 }
  0x18   :  { %p367_p10 = pnand %p365_p9, %p362_p8 }
  0x1a   :  { %370 = shalt.err (!%p367_p10)
}
  0x1b   :  { %s371_s1 = scalar_lea.vmem %s20_s8, 128  ;;  %p376_p12 = scmp.lt.s32.totalorder %s20_s8, %s20_s8 }
  0x1c   :  { %p372_p11 = scmp.ne.s32.totalorder %s20_s8, %s371_s1  ;;  %p377_p13 = scmp.lt.s32.totalorder %s371_s1, %s371_s1 }
  0x1e   :  { %p378_p0 = por %p377_p13, %p376_p12 }
  0x20   :  { %p379_p1 = pnand %p378_p0, %p372_p11 }
  0x22   :  { %382 = shalt.err (!%p379_p1)
}
  0x23   :  { %22 = dma.hbm_to_vmem [thread:$0]  %s532_s0, 128, %s20_s8, [#allocation3]  }
  0x24   :  { %s383_s22 = scalar_lea.hbm %s535_s3, 1024 }
  0x25   :  { %p384_p2 = scmp.ne.s32.totalorder %s535_s3, %s383_s22  ;;  %p387_p3 = scmp.lt.u32.totalorder %s383_s22, %s535_s3 }
  0x27   :  { %p389_p4 = pnand %p387_p3, %p384_p2 }
  0x29   :  { %392 = shalt.err (!%p389_p4)
}
  0x2a   :  { %s393_s27 = scalar_lea.vmem %s43_s10, 1024  ;;  %p398_p6 = scmp.lt.s32.totalorder %s43_s10, %s43_s10 }
  0x2b   :  { %p394_p5 = scmp.ne.s32.totalorder %s43_s10, %s393_s27  ;;  %p399_p7 = scmp.lt.s32.totalorder %s393_s27, %s393_s27 }
  0x2d   :  { %p400_p8 = por %p399_p7, %p398_p6 }
  0x2f   :  { %p401_p9 = pnand %p400_p8, %p394_p5 }
  0x31   :  { %404 = shalt.err (!%p401_p9)
}
  0x32   :  { %48 = dma.hbm_to_vmem [thread:$0]  %s535_s3, 1024, %s43_s10, [#allocation6], %s434_s28, %s434_s28, %s435_s29  }
  0x33   :  { %427 = dma.done.wait [#allocation3], 128  }
  0x34   :  { %428 = vsyncadd [#allocation3], 4294967168 }
  0x35   :  { %429 = dma.done.wait [#allocation6], 1536  }
  0x36   :  { %430 = vsyncadd [#allocation6], 4294965760  ;;  %v438_v0 = vmov 0.0|0.0   ;;  %vm439_vm0 = vmmov 0   ;;  %v440_v1 = vmov 0.0   ;;  %v61_v2 = vld [vmem:[#allocation5] sm:$0xff] }
  0x37   :  { %308 = vmatprep.subr.bf16.mxu0 %v438_v0  ;;  %286 = vmatprep.mubr.msk.f32.mxu0 %vm439_vm0, %v440_v1  ;;  %v62_v3 = vld [vmem:[#allocation5 + $0x8] sm:$0xff]  ;;  %v63_v4 = vld [vmem:[#allocation5 + $0x10] sm:$0xff]  ;;  %v64_v6 = vld [vmem:[#allocation5 + $0x18] sm:$0xff]  ;;  %vm72_vm1 = vcmask 261120   ;;  %vm168_vm2 = vcmask 523264   ;;  %s441_s7 = smov [#allocation8]  }
  0x38   :  { %314 = vmatprep.subr.bf16.mxu1 %v438_v0  ;;  %305 = vmatprep.mubr.msk.f32.mxu1 %vm439_vm0, %v440_v1  ;;  %v309_v5 = vpack.c.bf16 %v62_v3, %v61_v2  ;;  %v312_v7 = vpack.c.bf16 %v64_v6, %v63_v4  ;;  %v60_v8 = vld [vmem:[#allocation2] sm:$0xff]  ;;  %v153_v9 = vld [vmem:[#allocation7] sm:$0xff]  ;;  %v154_v10 = vld [vmem:[#allocation7 + $0x8] sm:$0xff]  ;;  %s249_s8 = sshll.u32 %s441_s7, 4  ;;  %s250_s8 = int_to_ptr.vmem [resolvable:$true] %s249_s8 }
  0x39   :  { %v315_v11 = vpack.c.bf16 %v154_v10, %v153_v9  ;;  %v155_v12 = vld [vmem:[#allocation7 + $0x10] sm:$0xff]  ;;  %v156_v13 = vld [vmem:[#allocation7 + $0x18] sm:$0xff]  ;;  %v157_v15 = vld [vmem:[#allocation7 + $0x20] sm:$0xff]  ;;  %p410_p11 = scmp.lt.s32.totalorder %s250_s8, %s250_s8 }
  0x3a   :  { %310 = vmatpush3.bf16.msra.mxu0 %v309_v5  ;;  %v318_v14 = vpack.c.bf16 %v156_v13, %v155_v12  ;;  %v158_v16 = vld [vmem:[#allocation7 + $0x28] sm:$0xff]  ;;  %v159_v18 = vld [vmem:[#allocation7 + $0x30] sm:$0xff]  ;;  %v160_v19 = vld [vmem:[#allocation7 + $0x38] sm:$0xff] }
  0x3b   :  { %311 = vmatprep.subr.bf16.mxu0 %v438_v0  ;;  %316 = vmatpush3.bf16.msra.mxu1 %v315_v11  ;;  %v321_v17 = vpack.c.bf16 %v158_v16, %v157_v15  ;;  %v324_v20 = vpack.c.bf16 %v160_v19, %v159_v18  ;;  %v259_v21 = vld [vmem:[%s534_s2] ss:$0 sm:$0xff]  ;;  %s405_s2 = scalar_lea.vmem %s250_s8, 128 }
  0x3c   :  { %317 = vmatprep.subr.bf16.mxu1 %v438_v0  ;;  %v262_v30 = vld [vmem:[%s536_s4] ss:$0 sm:$0xff]  ;;  %p406_p10 = scmp.ne.s32.totalorder %s250_s8, %s405_s2  ;;  %p411_p12 = scmp.lt.s32.totalorder %s405_s2, %s405_s2 }
  0x3e   :  { %313 = vmatpush3.bf16.msra.mxu0 %v312_v7  ;;  %p412_p13 = por %p411_p12, %p410_p11 }
  0x3f   :  { %319 = vmatpush3.bf16.msra.mxu1 %v318_v14 }
  0x40   :  { %320 = vmatprep.subr.bf16.mxu1 %v438_v0  ;;  %p413_p0 = pnand %p412_p13, %p406_p10 }
  0x41   :  { %287 = vmatmul.mubr.msk.f32.vlgmr.msra.gmra.mrb[0].mxu0 %vm72_vm1, %v60_v8 }
  0x43   :  { %322 = vmatpush3.bf16.msra.mxu1 %v321_v17 }
  0x44   :  { %323 = vmatprep.subr.bf16.mxu1 %v438_v0 }
  0x47   :  { %325 = vmatpush3.bf16.msra.mxu1 %v324_v20 }
 0x114   :  { %v142_v22 = vpop.f32.mrb[0].mxu0 }
 0x115   :  { %v143_v23 = vadd.f32 %v259_v21, %v142_v22  ;;  %v288_v24 = vpop.f32.mrb[1].mxu0 }
 0x117   :  { %v261_v25 = vmul.f32 -1.442695, %v143_v23 }
 0x119   :  { %335 = vpow2.f32 %v261_v25 }
 0x123   :  { %v336_v26 = vpop.eup %335 }
 0x124   :  { %v149_v27 = vadd.f32 1.0, %v336_v26 }
 0x126   :  { %337 = vrcp.f32 %v149_v27 }
 0x130   :  { %v338_v28 = vpop.eup %337 }
 0x131   :  { %v152_v29 = vmul.f32 %v338_v28, %v143_v23 }
 0x133   :  { %306 = vmatmul.mubr.msk.f32.vlgmr.msra.gmra.mrb[0].mxu1 %vm168_vm2, %v152_v29 }
 0x206   :  { %v238_v31 = vpop.f32.mrb[0].mxu1 }
 0x207   :  { %v239_v32 = vadd.f32 %v262_v30, %v238_v31  ;;  %v307_v33 = vpop.f32.mrb[1].mxu1 }
 0x209   :  { %242 = vst [vmem:[#allocation8] sm:$0xff] %v239_v32 }
 0x20a   :  { %416 = shalt.err (!%p413_p0)
}
 0x20b   :  { %s417_s11 = scalar_lea.hbm %s537_s5, 128 }
 0x20c   :  { %p418_p1 = scmp.ne.s32.totalorder %s537_s5, %s417_s11  ;;  %p421_p2 = scmp.lt.u32.totalorder %s417_s11, %s537_s5 }
 0x20e   :  { %p423_p3 = pnand %p421_p2, %p418_p1 }
 0x210   :  { %426 = shalt.err (!%p423_p3)
}
 0x211   :  { %252 = dma.vmem_to_hbm [thread:$0]  %s250_s8, 128, %s537_s5, [#allocation4]  }
 0x212   :  { %431 = dma.done.wait [#allocation4], 128  }
 0x213   :  { %432 = vsyncadd [#allocation4], 4294967168 }
 0x214   :  { %256 = vsyncpa [#allocation3], 1 }
 0x215   :  { %257 = vsyncpa [#allocation6], 1 }
 0x216   :  { %258 = vsyncpa [#allocation4], 1 }

</bundles_post_ra>
